<compile_context>
chip_gen: v7x
topology: tpu7x:2x2x1
jax: 0.10.0
libtpu: 0.0.40
codegen_flags: <defaults>
</compile_context>

<pallas_src>
import jax
import jax.numpy as jnp
from jax.experimental import pallas as pl
from jax.experimental.pallas import tpu as pltpu


def soft_q_kernel(xa_ref, w1_ref, b1_ref, w2_ref, b2_ref, w3_ref, b3_ref,
                  out_ref):
    bf16 = jnp.bfloat16

    # fc1 + ReLU (single fused K = obs_dim + act_dim matmul).
    h1 = jnp.dot(xa_ref[...], w1_ref[...],
                 preferred_element_type=jnp.float32)            # (TB, H) f32
    h1 = jnp.maximum((h1 + b1_ref[...]).astype(bf16), 0.0)      # (TB, H) bf16

    # fc2 + ReLU.
    h2 = jnp.dot(h1, w2_ref[...], preferred_element_type=jnp.float32)
    h2 = jnp.maximum((h2 + b2_ref[...]).astype(bf16), 0.0)      # (TB, H) bf16

    # fc3: contract W3 (1, H) against the hidden dim of h2 (TB, H) -> (1, TB).
    # Q-values land with batch on the lane axis, so the final store is a dense
    # row rather than a masked (TB, 1) column.
    q = jax.lax.dot_general(
        w3_ref[...], h2,
        dimension_numbers=(((1,), (1,)), ((), ())),
        preferred_element_type=jnp.float32)                     # (1, TB) f32

    out_ref[...] = (q + b3_ref[0, 0]).astype(out_ref.dtype)


def _plan_batch(batch, max_tile):
    """Return (tile_b, padded_batch).

    * batch < 256: one grid step over the whole (tiny) batch -- block dims
      equal the full array dims, so the (8, 128) rule is satisfied trivially.
    * batch >= 256: tile is a multiple of 128 (lane-dense output block),
      capped by max_tile and by batch//2 so the "parallel" grid has >= 2
      steps (v7x has 2 TensorCores).  Batch is zero-padded up to a tile
      multiple; no single-giant-block fallback.
    """
    if batch < 256:
        return batch, batch
    tile = min(max_tile, max(128, 128 * ((batch // 2) // 128)))
    padded = tile * ((batch + tile - 1) // tile)
    return tile, padded


def soft_q_forward(x, a, params, *, max_tile_b=1024):
    """x: (B, obs_dim), a: (B, act_dim) -> (B, 1) Q-values (float32)."""
    w1, b1, w2, b2, w3, b3 = params
    B = x.shape[0]
    in_dim, H = w1.shape

    # Fused, pre-cast input: cat([x, a], 1) in bf16 (wrapper-side, once).
    xa = jnp.concatenate([x, a], axis=1).astype(jnp.bfloat16)   # (B, in_dim)

    tile_b, padded_b = _plan_batch(B, max_tile_b)
    if padded_b != B:
        xa = jnp.pad(xa, ((0, padded_b - B), (0, 0)))
    grid = (padded_b // tile_b,)

    def resident(shape):  # weights/biases: same block every grid step
        return pl.BlockSpec(shape, lambda i: (0, 0))

    q_row = pl.pallas_call(
        soft_q_kernel,
        out_shape=jax.ShapeDtypeStruct((1, padded_b), jnp.float32),
        grid=grid,
        in_specs=[
            pl.BlockSpec((tile_b, in_dim), lambda i: (i, 0)),    # xa
            resident((in_dim, H)),                               # w1
            resident((1, H)),                                    # b1
            resident((H, H)),                                    # w2
            resident((1, H)),                                    # b2
            resident((1, H)),                                    # w3 row
            pl.BlockSpec(memory_space=pltpu.MemorySpace.SMEM),   # b3 scalar
        ],
        out_specs=pl.BlockSpec((1, tile_b), lambda i: (0, i)),
        compiler_params=pltpu.CompilerParams(
            dimension_semantics=("parallel",)),
    )(xa, w1, b1, w2, b2, w3, b3)

    # (1, padded_b) lane-dense kernel output -> (B, 1) to match PyTorch.
    return q_row[:, :B].reshape(B, 1)


def init_params(key, obs_dim, act_dim, hidden=256):
    """nn.Linear-style init (uniform +-1/sqrt(fan_in)), stored kernel-friendly:
    matmul weights in bf16 (fc1 weight kept UNSPLIT over in_dim = obs+act),
    biases in f32, fc3 weight as a (1, hidden) row, fc3 bias as (1, 1)."""
    in_dim = obs_dim + act_dim
    ks = jax.random.split(key, 6)

    def lin(kw, kb, fan_in, fan_out):
        bound = 1.0 / jnp.sqrt(float(fan_in))
        w = jax.random.uniform(kw, (fan_in, fan_out), jnp.float32, -bound, bound)
        b = jax.random.uniform(kb, (1, fan_out), jnp.float32, -bound, bound)
        return w, b

    w1, b1 = lin(ks[0], ks[1], in_dim, hidden)
    w2, b2 = lin(ks[2], ks[3], hidden, hidden)
    w3, b3 = lin(ks[4], ks[5], hidden, 1)

    return (w1.astype(jnp.bfloat16),                 # (in_dim, H)
            b1,                                      # (1, H) f32
            w2.astype(jnp.bfloat16),                 # (H, H)
            b2,                                      # (1, H) f32
            w3.T.astype(jnp.bfloat16),               # (1, H)
            b3.reshape(1, 1).astype(jnp.float32))    # (1, 1) scalar for SMEM


def soft_q_reference(x, a, params):
    """Pure-JAX reference mirroring the kernel math (bf16 operands, f32 acc,
    bf16 ReLU).  NOTE: deviates ~1e-2 from a pure-f32 PyTorch Linear stack
    due to one-time bf16 weight quantization."""
    w1, b1, w2, b2, w3, b3 = params
    bf16, f32 = jnp.bfloat16, jnp.float32
    xa = jnp.concatenate([x, a], axis=1).astype(bf16)
    h1 = jnp.dot(xa, w1, preferred_element_type=f32) + b1
    h1 = jnp.maximum(h1.astype(bf16), 0.0)
    h2 = jnp.dot(h1, w2, preferred_element_type=f32) + b2
    h2 = jnp.maximum(h2.astype(bf16), 0.0)
    q = jnp.dot(h2, w3.T, preferred_element_type=f32) + b3[0, 0]
    return q                                                     # (B, 1)


if __name__ == "__main__":
    key = jax.random.PRNGKey(0)
    k_obs, k_act, k_par = jax.random.split(key, 3)

    # Small, env-consistent shapes: obs_dim=12, act_dim=4, batch=8.
    B, OBS_DIM, ACT_DIM = 8, 12, 4

    x = jax.random.normal(k_obs, (B, OBS_DIM), jnp.float32)
    a = jax.random.normal(k_act, (B, ACT_DIM), jnp.float32)
    params = init_params(k_par, OBS_DIM, ACT_DIM)

    q = soft_q_forward(x, a, params)
    q = jax.block_until_ready(q)

    ref = soft_q_reference(x, a, params)
    assert q.shape == (B, 1), q.shape
    max_err = float(jnp.max(jnp.abs(q - ref)))
    assert jnp.allclose(q, ref, atol=2e-2, rtol=2e-2), (
        f"mismatch vs reference (max abs err {max_err})")

    print("KERNEL_OK")
</pallas_src>

<mosaic_0001>
module attributes {stable_mosaic.version = 11 : i64} {
  func.func @soft_q_kernel(%arg0: i32, %arg1: memref<8x16xbf16, #tpu.memory_space<vmem>>, %arg2: memref<16x256xbf16, #tpu.memory_space<vmem>>, %arg3: memref<1x256xf32, #tpu.memory_space<vmem>>, %arg4: memref<256x256xbf16, #tpu.memory_space<vmem>>, %arg5: memref<1x256xf32, #tpu.memory_space<vmem>>, %arg6: memref<1x256xbf16, #tpu.memory_space<vmem>>, %arg7: memref<1x1xf32, #tpu.memory_space<smem>>, %arg8: memref<1x8xf32, #tpu.memory_space<vmem>>) attributes {dimension_semantics = [#tpu.dimension_semantics<parallel>], iteration_bounds = array<i64: 1>, scalar_prefetch = 0 : i64, scratch_operands = 0 : i64, tpu.core_type = #tpu.core_type<tc>, window_params = [{transform_indices = @transform_0, window_bounds = array<i64: 8, 16>}, {pipeline_mode = #tpu.pipeline_mode<synchronous>, transform_indices = @transform_1, window_bounds = array<i64: 16, 256>}, {pipeline_mode = #tpu.pipeline_mode<synchronous>, transform_indices = @transform_2, window_bounds = array<i64: 1, 256>}, {pipeline_mode = #tpu.pipeline_mode<synchronous>, transform_indices = @transform_3, window_bounds = array<i64: 256, 256>}, {pipeline_mode = #tpu.pipeline_mode<synchronous>, transform_indices = @transform_4, window_bounds = array<i64: 1, 256>}, {pipeline_mode = #tpu.pipeline_mode<synchronous>, transform_indices = @transform_5, window_bounds = array<i64: 1, 256>}, {transform_indices = @transform_6, window_bounds = array<i64: 1, 1>}, {transform_indices = @transform_7, window_bounds = array<i64: 1, 8>}]} {
    %c0 = arith.constant 0 : index
    %c0_0 = arith.constant 0 : index
    %0 = vector.load %arg1[%c0, %c0_0] : memref<8x16xbf16, #tpu.memory_space<vmem>>, vector<8x16xbf16>
    %c0_1 = arith.constant 0 : index
    %c0_2 = arith.constant 0 : index
    %1 = vector.load %arg2[%c0_1, %c0_2] : memref<16x256xbf16, #tpu.memory_space<vmem>>, vector<16x256xbf16>
    %cst = arith.constant dense<0.000000e+00> : vector<8x256xf32>
    %2 = tpu.matmul %0, %1, %cst {dimension_numbers = #tpu.dot_dimension_numbers<[1], [0], [0], [1], [0, 0, 1, 1], [], []>} : vector<8x16xbf16>, vector<16x256xbf16>, vector<8x256xf32> -> vector<8x256xf32>
    %c0_3 = arith.constant 0 : index
    %c0_4 = arith.constant 0 : index
    %3 = vector.load %arg3[%c0_3, %c0_4] : memref<1x256xf32, #tpu.memory_space<vmem>>, vector<1x256xf32>
    %4 = vector.broadcast %3 : vector<1x256xf32> to vector<8x256xf32>
    %5 = arith.addf %2, %4 : vector<8x256xf32>
    %6 = arith.truncf %5 : vector<8x256xf32> to vector<8x256xbf16>
    %cst_5 = arith.constant 0.000000e+00 : bf16
    %7 = vector.broadcast %cst_5 : bf16 to vector<8x256xbf16>
    %8 = arith.maximumf %6, %7 : vector<8x256xbf16>
    %c0_6 = arith.constant 0 : index
    %c0_7 = arith.constant 0 : index
    %9 = vector.load %arg4[%c0_6, %c0_7] : memref<256x256xbf16, #tpu.memory_space<vmem>>, vector<256x256xbf16>
    %cst_8 = arith.constant dense<0.000000e+00> : vector<8x256xf32>
    %10 = tpu.matmul %8, %9, %cst_8 {dimension_numbers = #tpu.dot_dimension_numbers<[1], [0], [0], [1], [0, 0, 1, 1], [], []>} : vector<8x256xbf16>, vector<256x256xbf16>, vector<8x256xf32> -> vector<8x256xf32>
    %c0_9 = arith.constant 0 : index
    %c0_10 = arith.constant 0 : index
    %11 = vector.load %arg5[%c0_9, %c0_10] : memref<1x256xf32, #tpu.memory_space<vmem>>, vector<1x256xf32>
    %12 = vector.broadcast %11 : vector<1x256xf32> to vector<8x256xf32>
    %13 = arith.addf %10, %12 : vector<8x256xf32>
    %14 = arith.truncf %13 : vector<8x256xf32> to vector<8x256xbf16>
    %cst_11 = arith.constant 0.000000e+00 : bf16
    %15 = vector.broadcast %cst_11 : bf16 to vector<8x256xbf16>
    %16 = arith.maximumf %14, %15 : vector<8x256xbf16>
    %c0_12 = arith.constant 0 : index
    %c0_13 = arith.constant 0 : index
    %17 = vector.load %arg6[%c0_12, %c0_13] : memref<1x256xbf16, #tpu.memory_space<vmem>>, vector<1x256xbf16>
    %cst_14 = arith.constant dense<0.000000e+00> : vector<1x8xf32>
    %18 = tpu.matmul %17, %16, %cst_14 {dimension_numbers = #tpu.dot_dimension_numbers<[1], [1], [0], [0], [0, 0, 1, 0], [], []>} : vector<1x256xbf16>, vector<8x256xbf16>, vector<1x8xf32> -> vector<1x8xf32>
    %c0_15 = arith.constant 0 : index
    %c0_16 = arith.constant 0 : index
    %19 = memref.load %arg7[%c0_15, %c0_16] : memref<1x1xf32, #tpu.memory_space<smem>>
    %20 = vector.broadcast %19 : f32 to vector<1x8xf32>
    %21 = arith.addf %18, %20 : vector<1x8xf32>
    %c0_17 = arith.constant 0 : index
    %c0_18 = arith.constant 0 : index
    %22 = vector.load %arg8[%c0_17, %c0_18] : memref<1x8xf32, #tpu.memory_space<vmem>>, vector<1x8xf32>
    tpu.vector_store %arg8[%c0_17, %c0_18], %21 {strides = array<i32>} : memref<1x8xf32, #tpu.memory_space<vmem>>, vector<1x8xf32>,
    return
  }
  func.func @transform_0(%arg0: i32) -> (i32, i32) {
    %c0_i32 = arith.constant 0 : i32
    %c0_i32_0 = arith.constant 0 : i32
    return %arg0, %c0_i32 : i32, i32
  }
  func.func @transform_1(%arg0: i32) -> (i32, i32) {
    %c0_i32 = arith.constant 0 : i32
    %c0_i32_0 = arith.constant 0 : i32
    %c0_i32_1 = arith.constant 0 : i32
    return %c0_i32, %c0_i32_0 : i32, i32
  }
  func.func @transform_2(%arg0: i32) -> (i32, i32) {
    %c0_i32 = arith.constant 0 : i32
    %c0_i32_0 = arith.constant 0 : i32
    %c0_i32_1 = arith.constant 0 : i32
    return %c0_i32, %c0_i32_0 : i32, i32
  }
  func.func @transform_3(%arg0: i32) -> (i32, i32) {
    %c0_i32 = arith.constant 0 : i32
    %c0_i32_0 = arith.constant 0 : i32
    %c0_i32_1 = arith.constant 0 : i32
    return %c0_i32, %c0_i32_0 : i32, i32
  }
  func.func @transform_4(%arg0: i32) -> (i32, i32) {
    %c0_i32 = arith.constant 0 : i32
    %c0_i32_0 = arith.constant 0 : i32
    %c0_i32_1 = arith.constant 0 : i32
    return %c0_i32, %c0_i32_0 : i32, i32
  }
  func.func @transform_5(%arg0: i32) -> (i32, i32) {
    %c0_i32 = arith.constant 0 : i32
    %c0_i32_0 = arith.constant 0 : i32
    %c0_i32_1 = arith.constant 0 : i32
    return %c0_i32, %c0_i32_0 : i32, i32
  }
  func.func @transform_6(%arg0: i32) -> (i32, i32) {
    %c0_i32 = arith.constant 0 : i32
    %c0_i32_0 = arith.constant 0 : i32
    %c0_i32_1 = arith.constant 0 : i32
    return %c0_i32, %c0_i32_0 : i32, i32
  }
  func.func @transform_7(%arg0: i32) -> (i32, i32) {
    %c0_i32 = arith.constant 0 : i32
    %c0_i32_0 = arith.constant 0 : i32
    return %c0_i32, %arg0 : i32, i32
  }
}

</mosaic_0001>

<bundles_post_ra>
// kernel: tpu_custom_call.1
= control target key start
LH: loop header
LB: loop body
LE: loop exit
PB: predicated region body
PF: predicated region fallthrough
CT: control target
= control target key end

     0   :  { %13 = vsyncpa [#allocation4], 0  ;;  %s785_s0 = inlined_call_operand.hbm [shape: bf16[8,16], index: 0, kind: input, shape index: {}]   ;;  %s786_s1 = inlined_call_operand.hbm [shape: bf16[16,256], index: 1, kind: input, shape index: {}]   ;;  %s787_s2 = inlined_call_operand.vmem [shape: f32[1,256], index: 2, kind: input, shape index: {}]   ;;  %s788_s3 = inlined_call_operand.hbm [shape: bf16[256,256], index: 3, kind: input, shape index: {}]   ;;  %s789_s4 = inlined_call_operand.vmem [shape: f32[1,256], index: 4, kind: input, shape index: {}]   ;;  %s790_s5 = inlined_call_operand.vmem [shape: bf16[1,256], index: 5, kind: input, shape index: {}]   ;;  %s791_s6 = inlined_call_operand.<no memory space> [shape: f32[1,1], index: 6, kind: input, shape index: {}]   ;;  %s792_s7 = inlined_call_operand.hbm [shape: f32[1,8], index: 7, kind: output, shape index: {}]  }
   0x1   :  { %14 = vsyncpa [#allocation7], 0 }
   0x2   :  { %15 = vsyncpa [#allocation5], 0  ;;  %s666_s24 = smov [#allocation6]   ;;  %s572_s28 = scalar_lea.hbm %s786_s1, 256 }
   0x3   :  { %s31_s25 = sshll.u32 %s666_s24, 4  ;;  %p573_p0 = scmp.ne.s32.totalorder %s786_s1, %s572_s28  ;;  %s32_s25 = int_to_ptr.vmem [resolvable:$true] %s31_s25 }
   0x4   :  { %p576_p1 = scmp.lt.u32.totalorder %s572_s28, %s786_s1 }
   0x6   :  { %p578_p2 = pnand %p576_p1, %p573_p0 }
   0x8   :  { %581 = shalt.err (!%p578_p2)
}
   0x9   :  { %s582_s10 = scalar_lea.vmem %s32_s25, 256  ;;  %p587_p4 = scmp.lt.s32.totalorder %s32_s25, %s32_s25 }
   0xa   :  { %p583_p3 = scmp.ne.s32.totalorder %s32_s25, %s582_s10  ;;  %p588_p5 = scmp.lt.s32.totalorder %s582_s10, %s582_s10 }
   0xc   :  { %p589_p6 = por %p588_p5, %p587_p4 }
   0xe   :  { %p590_p7 = pnand %p589_p6, %p583_p3 }
  0x10   :  { %593 = shalt.err (!%p590_p7)
}
  0x11   :  { %s667_s11 = smov 128   ;;  %s668_s12 = smov 8  }
  0x12   :  { %37 = dma.hbm_to_vmem [thread:$0]  %s786_s1, 256, %s32_s25, [#allocation7], %s667_s11, %s667_s11, %s668_s12  }
  0x13   :  { %s669_s15 = smov [#allocation3]   ;;  %s670_s17 = smov [#allocation8]  }
  0x14   :  { %s22_s16 = sshll.u32 %s669_s15, 4  ;;  %s45_s18 = sshll.u32 %s670_s17, 4  ;;  %s23_s16 = int_to_ptr.vmem [resolvable:$true] %s22_s16  ;;  %s46_s18 = int_to_ptr.vmem [resolvable:$true] %s45_s18 }
  0x15   :  { %s594_s21 = scalar_lea.hbm %s785_s0, 64 }
  0x16   :  { %p595_p8 = scmp.ne.s32.totalorder %s785_s0, %s594_s21  ;;  %p598_p9 = scmp.lt.u32.totalorder %s594_s21, %s785_s0 }
  0x18   :  { %p600_p10 = pnand %p598_p9, %p595_p8 }
  0x1a   :  { %603 = shalt.err (!%p600_p10)
}
  0x1b   :  { %s604_s1 = scalar_lea.vmem %s23_s16, 64  ;;  %p609_p12 = scmp.lt.s32.totalorder %s23_s16, %s23_s16 }
  0x1c   :  { %p605_p11 = scmp.ne.s32.totalorder %s23_s16, %s604_s1  ;;  %p610_p13 = scmp.lt.s32.totalorder %s604_s1, %s604_s1 }
  0x1e   :  { %p611_p0 = por %p610_p13, %p609_p12 }
  0x20   :  { %p612_p1 = pnand %p611_p0, %p605_p11 }
  0x22   :  { %615 = shalt.err (!%p612_p1)
}
  0x23   :  { %25 = dma.hbm_to_vmem [thread:$0]  %s785_s0, 64, %s23_s16, [#allocation4]  }
  0x24   :  { %s616_s30 = scalar_lea.hbm %s788_s3, 4096 }
  0x25   :  { %p617_p2 = scmp.ne.s32.totalorder %s788_s3, %s616_s30  ;;  %p620_p3 = scmp.lt.u32.totalorder %s616_s30, %s788_s3 }
  0x27   :  { %p622_p4 = pnand %p620_p3, %p617_p2 }
  0x29   :  { %625 = shalt.err (!%p622_p4)
}
  0x2a   :  { %s626_s14 = scalar_lea.vmem %s46_s18, 4096  ;;  %p631_p6 = scmp.lt.s32.totalorder %s46_s18, %s46_s18 }
  0x2b   :  { %p627_p5 = scmp.ne.s32.totalorder %s46_s18, %s626_s14  ;;  %p632_p7 = scmp.lt.s32.totalorder %s626_s14, %s626_s14 }
  0x2d   :  { %p633_p8 = por %p632_p7, %p631_p6 }
  0x2f   :  { %p634_p9 = pnand %p633_p8, %p627_p5 }
  0x31   :  { %637 = shalt.err (!%p634_p9)
}
  0x32   :  { %51 = dma.hbm_to_vmem [thread:$0]  %s788_s3, 4096, %s46_s18, [#allocation7], %s667_s11, %s667_s11, %s668_s12  }
  0x33   :  { %660 = dma.done.wait [#allocation4], 64  }
  0x34   :  { %661 = vsyncadd [#allocation4], 4294967232 }
  0x35   :  { %662 = dma.done.wait [#allocation7], 4352  }
  0x36   :  { %663 = vsyncadd [#allocation7], 4294962944  ;;  %v671_v0 = vmov 0   ;;  %v521_v1 = vld [vmem:[#allocation6 + $0x4] ss:$8 sps:$4 sm:$0xff]   ;;  %vm93_vm0 = vcmask 130048   ;;  %v73_v36 = vlaneseq }
  0x37   :  { %129 = vmatprep.mubr.bf16.mxu0 %v671_v0  ;;  %v523_v2 = vld [vmem:[#allocation6] ss:$8 sps:$4 sm:$0xff]   ;;  %v68_v3 = vld [vmem:[#allocation3] sm:$0xf]  ;;  %97 = vmatprep.subr.bf16.mxu0 %v521_v1  ;;  %v526_v5 = vld [vmem:[#allocation8] ss:$8 sps:$4 sm:$0xff]  }
  0x38   :  { %v524_v4 = vld [vmem:[#allocation8 + $0x4] ss:$8 sps:$4 sm:$0xff]   ;;  %98 = vmatpush1.bf16.msra.mxu0 %v523_v2  ;;  %v527_v6 = vld [vmem:[#allocation8 + $0x14] ss:$8 sps:$4 sm:$0xff]   ;;  %v529_v7 = vld [vmem:[#allocation8 + $0x10] ss:$8 sps:$4 sm:$0xff]  }
  0x39   :  { %346 = vmatprep.subr.bf16.mxu1 %v524_v4  ;;  %v530_v8 = vld [vmem:[#allocation8 + $0x24] ss:$8 sps:$4 sm:$0xff]   ;;  %v532_v9 = vld [vmem:[#allocation8 + $0x20] ss:$8 sps:$4 sm:$0xff]   ;;  %v533_v10 = vld [vmem:[#allocation8 + $0x34] ss:$8 sps:$4 sm:$0xff]  }
  0x3a   :  { %347 = vmatpush1.bf16.msra.mxu1 %v526_v5  ;;  %v535_v11 = vld [vmem:[#allocation8 + $0x30] ss:$8 sps:$4 sm:$0xff]   ;;  %v536_v12 = vld [vmem:[#allocation8 + $0x44] ss:$8 sps:$4 sm:$0xff]   ;;  %v538_v13 = vld [vmem:[#allocation8 + $0x40] ss:$8 sps:$4 sm:$0xff]  }
  0x3b   :  { %479 = vmatmul.mubr.msk.bf16.vlgmr.msra.gmra.mrb[0].mxu0 %vm93_vm0, %v68_v3  ;;  %348 = vmatprep.subr.bf16.mxu1 %v527_v6  ;;  %v539_v14 = vld [vmem:[#allocation8 + $0x54] ss:$8 sps:$4 sm:$0xff]   ;;  %v541_v15 = vld [vmem:[#allocation8 + $0x50] ss:$8 sps:$4 sm:$0xff]   ;;  %v542_v16 = vld [vmem:[#allocation8 + $0x64] ss:$8 sps:$4 sm:$0xff]  }
  0x3c   :  { %v544_v17 = vld [vmem:[#allocation8 + $0x60] ss:$8 sps:$4 sm:$0xff]   ;;  %v545_v18 = vld [vmem:[#allocation8 + $0x74] ss:$8 sps:$4 sm:$0xff]   ;;  %v547_v19 = vld [vmem:[#allocation8 + $0x70] ss:$8 sps:$4 sm:$0xff]  }
  0x3d   :  { %v548_v20 = vld [vmem:[#allocation8 + $0x84] ss:$8 sps:$4 sm:$0xff]   ;;  %v550_v21 = vld [vmem:[#allocation8 + $0x80] ss:$8 sps:$4 sm:$0xff]   ;;  %v551_v22 = vld [vmem:[#allocation8 + $0x94] ss:$8 sps:$4 sm:$0xff]  }
  0x3e   :  { %349 = vmatpush1.bf16.msra.mxu1 %v529_v7  ;;  %v553_v23 = vld [vmem:[#allocation8 + $0x90] ss:$8 sps:$4 sm:$0xff]   ;;  %v554_v24 = vld [vmem:[#allocation8 + $0xa4] ss:$8 sps:$4 sm:$0xff]   ;;  %v556_v25 = vld [vmem:[#allocation8 + $0xa0] ss:$8 sps:$4 sm:$0xff]  }
  0x3f   :  { %350 = vmatprep.subr.bf16.mxu1 %v530_v8  ;;  %v557_v26 = vld [vmem:[#allocation8 + $0xb4] ss:$8 sps:$4 sm:$0xff]   ;;  %v559_v27 = vld [vmem:[#allocation8 + $0xb0] ss:$8 sps:$4 sm:$0xff]   ;;  %v560_v28 = vld [vmem:[#allocation8 + $0xc4] ss:$8 sps:$4 sm:$0xff]  }
  0x40   :  { %v562_v29 = vld [vmem:[#allocation8 + $0xc0] ss:$8 sps:$4 sm:$0xff]   ;;  %v563_v30 = vld [vmem:[#allocation8 + $0xd4] ss:$8 sps:$4 sm:$0xff]   ;;  %v565_v31 = vld [vmem:[#allocation8 + $0xd0] ss:$8 sps:$4 sm:$0xff]  }
  0x41   :  { %v566_v32 = vld [vmem:[#allocation8 + $0xe4] ss:$8 sps:$4 sm:$0xff]   ;;  %v568_v33 = vld [vmem:[#allocation8 + $0xe0] ss:$8 sps:$4 sm:$0xff]   ;;  %v569_v34 = vld [vmem:[#allocation8 + $0xf4] ss:$8 sps:$4 sm:$0xff]  }
  0x42   :  { %351 = vmatpush1.bf16.msra.mxu1 %v532_v9  ;;  %v571_v35 = vld [vmem:[#allocation8 + $0xf0] ss:$8 sps:$4 sm:$0xff]   ;;  %v74_v37 = vshrl.u32 %v73_v36, 7  ;;  %v71_v39 = vld [vmem:[%s787_s2] sm:$0x3]  ;;  %vm459_vm1 = vcmask 57344  }
  0x43   :  { %352 = vmatprep.subr.bf16.mxu1 %v533_v10  ;;  %v672_v53 = vmov 1966171168   ;;  %v512_v55 = vld.sshfl [vmem:[%s790_s5] sm:$0x11 pattern:$0x75316420] }
  0x44   :  { %v75_v38 = vsub.s32 0, %v74_v37  ;;  %v79_v40 = vsub.s32 1, %v74_v37  ;;  %v404_v54 = vunpack.c.l.s4 %v672_v53  ;;  %v402_v57 = vcombine.high %v512_v55, %v512_v55  ;;  %v174_v61 = vld [vmem:[%s789_s4] sm:$0x3]  ;;  %s673_s4 = smov [#allocation9]  }
  0x45   :  { %s467_s19 = sshll.u32 %s673_s4, 4  ;;  %s468_s19 = int_to_ptr.vmem [resolvable:$true] %s467_s19 }
  0x46   :  { %353 = vmatpush1.bf16.msra.mxu1 %v535_v11  ;;  %v76_v41 = vrot.slane %v71_v39, %v75_v38  ;;  %v80_v42 = vrot.slane %v71_v39, %v79_v40  ;;  %v405_v56 = vunpack.c.0.s8 %v404_v54  ;;  %v179_v62 = vrot.slane %v174_v61, %v75_v38  ;;  %s638_s20 = scalar_lea.vmem %s468_s19, 16  ;;  %s642_s21 = scalar_lea.vmem %s468_s19, 32 }
  0x47   :  { %354 = vmatprep.subr.bf16.mxu1 %v536_v12  ;;  %v183_v63 = vrot.slane %v174_v61, %v79_v40  ;;  %v393_v11 = vstv %s791_s6  ;;  %p639_p10 = scmp.ne.s32.totalorder %s468_s19, %s638_s20  ;;  %p643_p11 = scmp.lt.s32.totalorder %s468_s19, %s468_s19 }
  0x48   :  { %v408_v58 = vsub.s32 %v405_v56, %v74_v37  ;;  %p644_p12 = scmp.lt.s32.totalorder %s642_s21, %s638_s20 }
  0x4a   :  { %355 = vmatpush1.bf16.msra.mxu1 %v538_v13  ;;  %v416_v59 = vrot.slane %v402_v57, %v408_v58  ;;  %v409_v60 = vrot.slane %v512_v55, %v408_v58  ;;  %p645_p13 = por %p644_p12, %p643_p11 }
  0x4b   :  { %356 = vmatprep.subr.bf16.mxu1 %v539_v14 }
  0x4c   :  { %451 = vmatprep.mubr.bf16.mxu0 %v416_v59  ;;  %p646_p0 = pnand %p645_p13, %p639_p10 }
  0x4e   :  { %357 = vmatpush1.bf16.msra.mxu1 %v541_v15 }
  0x4f   :  { %358 = vmatprep.subr.bf16.mxu1 %v542_v16 }
  0x52   :  { %359 = vmatpush1.bf16.msra.mxu1 %v544_v17 }
  0x53   :  { %360 = vmatprep.subr.bf16.mxu1 %v545_v18 }
  0x56   :  { %361 = vmatpush1.bf16.msra.mxu1 %v547_v19 }
  0x57   :  { %362 = vmatprep.subr.bf16.mxu1 %v548_v20 }
  0x5a   :  { %363 = vmatpush1.bf16.msra.mxu1 %v550_v21 }
  0x5b   :  { %364 = vmatprep.subr.bf16.mxu1 %v551_v22 }
  0x5e   :  { %365 = vmatpush1.bf16.msra.mxu1 %v553_v23 }
  0x5f   :  { %366 = vmatprep.subr.bf16.mxu1 %v554_v24 }
  0x62   :  { %367 = vmatpush1.bf16.msra.mxu1 %v556_v25 }
  0x63   :  { %368 = vmatprep.subr.bf16.mxu1 %v557_v26 }
  0x66   :  { %369 = vmatpush1.bf16.msra.mxu1 %v559_v27 }
  0x67   :  { %370 = vmatprep.subr.bf16.mxu1 %v560_v28 }
  0x6a   :  { %371 = vmatpush1.bf16.msra.mxu1 %v562_v29 }
  0x6b   :  { %372 = vmatprep.subr.bf16.mxu1 %v563_v30 }
  0x6e   :  { %373 = vmatpush1.bf16.msra.mxu1 %v565_v31 }
  0x6f   :  { %374 = vmatprep.subr.bf16.mxu1 %v566_v32 }
  0x72   :  { %375 = vmatpush1.bf16.msra.mxu1 %v568_v33 }
  0x73   :  { %376 = vmatprep.subr.bf16.mxu1 %v569_v34 }
  0x76   :  { %377 = vmatpush1.bf16.msra.mxu1 %v571_v35 }
 0x10e   :  { %v131_v43 = vpop.f32.mrb[0].mxu0 }
 0x10f   :  { %v132_v44 = vadd.f32 %v131_v43, %v76_v41  ;;  %v133_v45 = vpop.f32.mrb[1].mxu0 }
 0x110   :  { %v134_v46 = vadd.f32 %v133_v45, %v80_v42  ;;  %v135_v47 = vpop.f32.mrb[2].mxu0 }
 0x111   :  { %v138_v48 = vpack.c.bf16 %v132_v44, %v132_v44  ;;  %v136_v49 = vpop.f32.mrb[3].mxu0 }
 0x112   :  { %v139_v50 = vpack.c.bf16 %v134_v46, %v134_v46 }
 0x113   :  { %v140_v52 = vmax.bf16 %v671_v0, %v138_v48 }
 0x114   :  { %v141_v51 = vmax.bf16 %v671_v0, %v139_v50 }
 0x116   :  { %378 = vmatprep.mubr.bf16.mxu1 %v141_v51 }
 0x117   :  { %379 = vmatmul.mubr.bf16.vlgmr.msra.gmra.mrb[0].mxu1 %v140_v52 }
 0x1ea   :  { %v380_v1 = vpop.f32.mrb[0].mxu1 }
 0x1eb   :  { %v381_v2 = vadd.f32 %v380_v1, %v179_v62  ;;  %v382_v3 = vpop.f32.mrb[1].mxu1 }
 0x1ec   :  { %v383_v4 = vadd.f32 %v382_v3, %v183_v63  ;;  %v384_v5 = vpop.f32.mrb[2].mxu1 }
 0x1ed   :  { %v387_v6 = vpack.c.bf16 %v381_v2, %v381_v2  ;;  %v385_v7 = vpop.f32.mrb[3].mxu1 }
 0x1ee   :  { %v388_v8 = vpack.c.bf16 %v383_v4, %v383_v4 }
 0x1ef   :  { %v389_v10 = vmax.bf16 %v671_v0, %v387_v6 }
 0x1f0   :  { %v390_v9 = vmax.bf16 %v671_v0, %v388_v8 }
 0x1f2   :  { %419 = vmatprep.subr.bf16.mxu0 %v390_v9 }
 0x1f3   :  { %420 = vmatpush1.bf16.xpose.msra.mxu0 %v389_v10 }
 0x1fa   :  { %452 = vmatmul.mubr.bf16.vlgmr.msra.gmra.mrb[4].mxu0 %v409_v60 }
 0x2cd   :  { %v453_v12 = vpop.f32.mrb[4].mxu0 }
 0x2ce   :  { %v454_v13 = vadd.f32 %v453_v12, %v393_v11  ;;  %v455_v14 = vpop.f32.mrb[5].mxu0 }
 0x2cf   :  { %v456_v15 = vpop.f32.mrb[6].mxu0 }
 0x2d0   :  { %v457_v16 = vpop.f32.mrb[7].mxu0  ;;  %460 = vst.msk [vmem:[#allocation9] sm:$0x1] %vm459_vm1, %v454_v13 }
 0x2d1   :  { %649 = shalt.err (!%p646_p0)
}
 0x2d2   :  { %s650_s23 = scalar_lea.hbm %s792_s7, 16 }
 0x2d3   :  { %p651_p1 = scmp.ne.s32.totalorder %s792_s7, %s650_s23  ;;  %p654_p2 = scmp.lt.u32.totalorder %s650_s23, %s792_s7 }
 0x2d5   :  { %p656_p3 = pnand %p654_p2, %p651_p1 }
 0x2d7   :  { %659 = shalt.err (!%p656_p3)
}
 0x2d8   :  { %470 = dma.vmem_to_hbm [thread:$0]  %s468_s19, 16, %s792_s7, [#allocation5]  }
 0x2d9   :  { %664 = dma.done.wait [#allocation5], 16  }
 0x2da   :  { %665 = vsyncadd [#allocation5], 4294967280 }
 0x2db   :  { %474 = vsyncpa [#allocation4], 1 }
 0x2dc   :  { %475 = vsyncpa [#allocation7], 1 }
 0x2dd   :  { %476 = vsyncpa [#allocation5], 1 }

</bundles_post_ra>
